<compile_context>
chip_gen: v6e
topology: v6e:2x2x1
jax: 0.10.0
libtpu: 0.0.40
codegen_flags: <defaults>
</compile_context>

<pallas_src>
import functools

import jax
import jax.numpy as jnp
from jax.experimental import pallas as pl
from jax.experimental.pallas import tpu as pltpu

_LANE = 128
_SUBLANE = 8


def _round_up(n, m):
    return ((n + m - 1) // m) * m


def _tau_norm_kernel(x_ref, wt_ref, b_ref, o_ref):
    # One MXU pass (bf16 operands, f32 accumulation) + f32 bias add (VPU).
    logits = jnp.dot(x_ref[...], wt_ref[...], preferred_element_type=jnp.float32)
    o_ref[...] = logits + b_ref[...]


def prepare_params(weight, bias, scales):
    """One-time parameter prep (checkpoint-load time, NOT per call).

    weight: [C, F], bias: [C], scales: [C] (all frozen at inference)
      -> w_t_pad: [F_pad, C_pad] bf16  (scales folded in, transposed, zero-padded)
         b_fold:  [1, C_pad]     f32   (scales folded in, zero-padded)
    C_pad = round_up(C, 128) -> lane-dense output stores.
    F_pad = round_up(F, 128) -> lane-dense MXU feed (x is zero-padded to F_pad
    at the call boundary; the padded weight rows are zero so they contribute
    nothing). Padded classes produce exactly 0 and are sliced off.
    """
    C, F = weight.shape
    c_pad = _round_up(C, _LANE)
    f_pad = _round_up(F, _LANE)

    s = scales.astype(jnp.float32)
    w_scaled = weight.astype(jnp.float32) * s[:, None]          # fold scales
    w_t_pad = jnp.zeros((f_pad, c_pad), jnp.float32).at[:F, :C].set(w_scaled.T)
    b_fold = jnp.zeros((1, c_pad), jnp.float32).at[:, :C].set(
        bias.astype(jnp.float32) * s)
    return w_t_pad.astype(jnp.bfloat16), b_fold


@functools.partial(jax.jit, static_argnames=("num_classes", "slice_output"))
def tau_norm_classifier(x, w_t_pad, b_fold, *, num_classes, slice_output=True):
    """x: [B, F]; prepped params from prepare_params() -> [B, num_classes] f32.

    With slice_output=False the lane-dense [B, C_pad] result is returned
    (padded classes are exactly 0) for handoff to another Pallas/TPU consumer.
    """
    B, F = x.shape
    f_pad, c_pad = w_t_pad.shape

    # Batch tile: tiny batches run as a single invocation; large batches tile
    # over B with a parallel grid axis (shards across v7x's two TensorCores).
    bm = max(_SUBLANE, min(256, _round_up(B, _SUBLANE)))
    b_rows = _round_up(B, bm)

    # Zero-pad x to [b_rows, F_pad] and cast the MXU operand to bf16 (padded
    # rows/features multiply zero weight rows, so the logits are unaffected).
    x_p = jnp.zeros((b_rows, f_pad), jnp.bfloat16).at[:B, :F].set(
        x.astype(jnp.bfloat16))

    grid = (b_rows // bm,)

    # Explicit VMEM budget (double-buffered inputs + output); matters once
    # shapes grow on v7x's 64 MiB physical VMEM.
    vmem_bytes = 2 * (2 * bm * f_pad + 2 * f_pad * c_pad + 4 * c_pad
                      + 4 * bm * c_pad) + (1 << 20)
    vmem_bytes = int(min(max(vmem_bytes, 4 << 20), 64 << 20))

    out_padded = pl.pallas_call(
        _tau_norm_kernel,
        out_shape=jax.ShapeDtypeStruct((b_rows, c_pad), jnp.float32),
        grid=grid,
        in_specs=[
            pl.BlockSpec((bm, f_pad), lambda i: (i, 0)),      # x tile over B
            pl.BlockSpec((f_pad, c_pad), lambda i: (0, 0)),   # weight, resident
            pl.BlockSpec((1, c_pad), lambda i: (0, 0)),       # fused bias
        ],
        out_specs=pl.BlockSpec((bm, c_pad), lambda i: (i, 0)),
        compiler_params=pltpu.CompilerParams(
            dimension_semantics=("parallel",),
            vmem_limit_bytes=vmem_bytes,
        ),
        cost_estimate=pl.CostEstimate(
            flops=2 * b_rows * f_pad * c_pad,
            transcendentals=0,
            bytes_accessed=(2 * (b_rows * f_pad + f_pad * c_pad)
                            + 4 * (c_pad + b_rows * c_pad)),
        ),
    )(x_p, w_t_pad, b_fold)

    out = out_padded[:B]
    if slice_output:
        out = out[:, :num_classes]
    return out


def reference(x, weight, bias, scales):
    return (x @ weight.T + bias) * scales


if __name__ == "__main__":
    feat_dim = 190
    num_classes = 10
    batch = 8

    key = jax.random.PRNGKey(0)
    kx, kw, kb = jax.random.split(key, 3)

    # Deterministic synthetic parameters (shapes match nn.Linear(190, 10) + scales).
    bound = 1.0 / (feat_dim ** 0.5)
    weight = jax.random.uniform(kw, (num_classes, feat_dim),
                                minval=-bound, maxval=bound, dtype=jnp.float32)
    bias = jax.random.uniform(kb, (num_classes,),
                              minval=-bound, maxval=bound, dtype=jnp.float32)
    scales = jnp.ones((num_classes,), dtype=jnp.float32)  # Parameter(torch.ones(C))

    x = jax.random.normal(kx, (batch, feat_dim), dtype=jnp.float32)

    # One-time parameter prep (analogous to loading the checkpoint) -- off the
    # per-call hot path.
    w_t_pad, b_fold = jax.block_until_ready(prepare_params(weight, bias, scales))

    out = tau_norm_classifier(x, w_t_pad, b_fold, num_classes=num_classes)
    out = jax.block_until_ready(out)

    ref = reference(x, weight, bias, scales)
    assert out.shape == (batch, num_classes)
    # bf16 MXU operands -> tolerance loosened vs. the pure-f32 path.
    assert jnp.allclose(out, ref, atol=2e-2, rtol=2e-2), "mismatch vs reference"

    print("KERNEL_OK")
</pallas_src>

<mosaic_0001>
module attributes {stable_mosaic.version = 11 : i64} {
  func.func @_tau_norm_kernel(%arg0: i32, %arg1: memref<8x256xbf16, #tpu.memory_space<vmem>>, %arg2: memref<256x128xbf16, #tpu.memory_space<vmem>>, %arg3: memref<1x128xf32, #tpu.memory_space<vmem>>, %arg4: memref<8x128xf32, #tpu.memory_space<vmem>>) attributes {dimension_semantics = [#tpu.dimension_semantics<parallel>], iteration_bounds = array<i64: 1>, scalar_prefetch = 0 : i64, scratch_operands = 0 : i64, tpu.core_type = #tpu.core_type<tc>, window_params = [{transform_indices = @transform_0, window_bounds = array<i64: 8, 256>}, {pipeline_mode = #tpu.pipeline_mode<synchronous>, transform_indices = @transform_1, window_bounds = array<i64: 256, 128>}, {pipeline_mode = #tpu.pipeline_mode<synchronous>, transform_indices = @transform_2, window_bounds = array<i64: 1, 128>}, {transform_indices = @transform_3, window_bounds = array<i64: 8, 128>}]} {
    %c0 = arith.constant 0 : index
    %c0_0 = arith.constant 0 : index
    %0 = vector.load %arg1[%c0, %c0_0] : memref<8x256xbf16, #tpu.memory_space<vmem>>, vector<8x256xbf16>
    %c0_1 = arith.constant 0 : index
    %c0_2 = arith.constant 0 : index
    %1 = vector.load %arg2[%c0_1, %c0_2] : memref<256x128xbf16, #tpu.memory_space<vmem>>, vector<256x128xbf16>
    %cst = arith.constant dense<0.000000e+00> : vector<8x128xf32>
    %2 = tpu.matmul %0, %1, %cst {dimension_numbers = #tpu.dot_dimension_numbers<[1], [0], [0], [1], [0, 0, 1, 1], [], []>} : vector<8x256xbf16>, vector<256x128xbf16>, vector<8x128xf32> -> vector<8x128xf32>
    %c0_3 = arith.constant 0 : index
    %c0_4 = arith.constant 0 : index
    %3 = vector.load %arg3[%c0_3, %c0_4] : memref<1x128xf32, #tpu.memory_space<vmem>>, vector<1x128xf32>
    %4 = vector.broadcast %3 : vector<1x128xf32> to vector<8x128xf32>
    %5 = arith.addf %2, %4 : vector<8x128xf32>
    %c0_5 = arith.constant 0 : index
    %c0_6 = arith.constant 0 : index
    %6 = vector.load %arg4[%c0_5, %c0_6] : memref<8x128xf32, #tpu.memory_space<vmem>>, vector<8x128xf32>
    tpu.vector_store %arg4[%c0_5, %c0_6], %5 {strides = array<i32>} : memref<8x128xf32, #tpu.memory_space<vmem>>, vector<8x128xf32>,
    return
  }
  func.func @transform_0(%arg0: i32) -> (i32, i32) {
    %c0_i32 = arith.constant 0 : i32
    %c0_i32_0 = arith.constant 0 : i32
    return %arg0, %c0_i32 : i32, i32
  }
  func.func @transform_1(%arg0: i32) -> (i32, i32) {
    %c0_i32 = arith.constant 0 : i32
    %c0_i32_0 = arith.constant 0 : i32
    %c0_i32_1 = arith.constant 0 : i32
    return %c0_i32, %c0_i32_0 : i32, i32
  }
  func.func @transform_2(%arg0: i32) -> (i32, i32) {
    %c0_i32 = arith.constant 0 : i32
    %c0_i32_0 = arith.constant 0 : i32
    %c0_i32_1 = arith.constant 0 : i32
    return %c0_i32, %c0_i32_0 : i32, i32
  }
  func.func @transform_3(%arg0: i32) -> (i32, i32) {
    %c0_i32 = arith.constant 0 : i32
    %c0_i32_0 = arith.constant 0 : i32
    return %arg0, %c0_i32 : i32, i32
  }
}

</mosaic_0001>

<bundles_post_ra>
// kernel: tau_norm_classifier.1
= control target key start
LH: loop header
LB: loop body
LE: loop exit
PB: predicated region body
PF: predicated region fallthrough
CT: control target
= control target key end

     0   :  { %8 = vsyncpa [#allocation3], 0  ;;  %s372_s0 = inlined_call_operand.vmem [shape: bf16[8,256], index: 0, kind: input, shape index: {}]   ;;  %s373_s1 = inlined_call_operand.hbm [shape: bf16[256,128], index: 1, kind: input, shape index: {}]   ;;  %s374_s2 = inlined_call_operand.vmem [shape: f32[1,128], index: 2, kind: input, shape index: {}]   ;;  %s375_s3 = inlined_call_operand.hbm [shape: f32[8,128], index: 3, kind: output, shape index: {}]  }
   0x1   :  { %9 = vsyncpa [#allocation4], 0  ;;  %s336_s12 = smov [#allocation2]  }
   0x2   :  { %s17_s13 = sshll.u32 %s336_s12, 4  ;;  %s18_s13 = int_to_ptr.vmem [resolvable:$true] %s17_s13 }
   0x3   :  { %s300_s14 = scalar_lea.vmem %s18_s13, 2048  ;;  %p305_p1 = scmp.lt.s32.totalorder %s18_s13, %s18_s13 }
   0x4   :  { %p301_p0 = scmp.ne.s32.totalorder %s18_s13, %s300_s14  ;;  %p306_p2 = scmp.lt.s32.totalorder %s300_s14, %s300_s14 }
   0x6   :  { %p307_p3 = por %p306_p2, %p305_p1 }
   0x8   :  { %p308_p4 = pnand %p307_p3, %p301_p0 }
   0xa   :  { %311 = shalt.err (!%p308_p4)
}
   0xb   :  { %s337_s15 = smov 64   ;;  %s338_s16 = smov 4  }
   0xc   :  { %23 = dma.hbm_to_vmem [thread:$0]  %s373_s1, 2048, %s18_s13, [#allocation3], %s337_s15, %s337_s15, %s338_s16  }
   0xd   :  { %332 = dma.done.wait [#allocation3], 2048  }
   0xe   :  { %333 = vsyncadd [#allocation3], 4294965248  ;;  %v274_v0 = vld [vmem:[#allocation2 + $0x78] sm:$0xff]   ;;  %v276_v2 = vld [vmem:[#allocation2 + $0x70] sm:$0xff]  }
   0xf   :  { %v275_v1 = vld [vmem:[#allocation2 + $0x38] sm:$0xff]   ;;  %248 = vmatprep.subr.bf16.mxu0 %v274_v0  ;;  %v277_v3 = vld [vmem:[#allocation2 + $0x30] sm:$0xff]   ;;  %v278_v4 = vld [vmem:[#allocation2 + $0x68] sm:$0xff]  }
  0x10   :  { %249 = vmatpush3.bf16.msra.mxu0 %v275_v1  ;;  %v279_v5 = vld [vmem:[#allocation2 + $0x28] sm:$0xff]   ;;  %v280_v6 = vld [vmem:[#allocation2 + $0x60] sm:$0xff]   ;;  %v282_v8 = vld [vmem:[#allocation2 + $0x58] sm:$0xff]  }
  0x11   :  { %250 = vmatprep.subr.bf16.mxu0 %v276_v2  ;;  %v281_v7 = vld [vmem:[#allocation2 + $0x20] sm:$0xff]   ;;  %v283_v9 = vld [vmem:[#allocation2 + $0x18] sm:$0xff]   ;;  %v284_v10 = vld [vmem:[#allocation2 + $0x50] sm:$0xff]  }
  0x12   :  { %v30_v11 = vld [vmem:[%s372_s0] sm:$0xff]  ;;  %v285_v13 = vld [vmem:[#allocation2 + $0x10] sm:$0xff]   ;;  %v286_v14 = vld [vmem:[#allocation2 + $0x48] sm:$0xff]   ;;  %s339_s0 = smov [#allocation5]  }
  0x13   :  { %v231_v12 = vcombine.high %v30_v11, %v30_v11  ;;  %v287_v15 = vld [vmem:[#allocation2 + $0x8] sm:$0xff]   ;;  %v288_v16 = vld [vmem:[#allocation2 + $0x40] sm:$0xff]   ;;  %v230_v18 = vcombine.low %v30_v11, %v30_v11  ;;  %s220_s22 = sshll.u32 %s339_s0, 4  ;;  %s221_s22 = int_to_ptr.vmem [resolvable:$true] %s220_s22 }
  0x14   :  { %251 = vmatpush3.bf16.msra.mxu0 %v277_v3  ;;  %v289_v17 = vld [vmem:[#allocation2] sm:$0xff]   ;;  %s312_s23 = scalar_lea.vmem %s221_s22, 128  ;;  %p317_p6 = scmp.lt.s32.totalorder %s221_s22, %s221_s22 }
  0x15   :  { %252 = vmatprep.subr.bf16.mxu0 %v278_v4  ;;  %205 = vmatprep.mubr.bf16.mxu0 %v231_v12  ;;  %v229_v20 = vld [vmem:[%s374_s2] ss:$0 sm:$0xff]  ;;  %p313_p5 = scmp.ne.s32.totalorder %s221_s22, %s312_s23  ;;  %p318_p7 = scmp.lt.s32.totalorder %s312_s23, %s312_s23 }
  0x17   :  { %p319_p8 = por %p318_p7, %p317_p6 }
  0x18   :  { %253 = vmatpush3.bf16.msra.mxu0 %v279_v5 }
  0x19   :  { %254 = vmatprep.subr.bf16.mxu0 %v280_v6  ;;  %p320_p9 = pnand %p319_p8, %p313_p5 }
  0x1c   :  { %255 = vmatpush3.bf16.msra.mxu0 %v281_v7 }
  0x1d   :  { %256 = vmatprep.subr.bf16.mxu0 %v282_v8 }
  0x20   :  { %257 = vmatpush3.bf16.msra.mxu0 %v283_v9 }
  0x21   :  { %258 = vmatprep.subr.bf16.mxu0 %v284_v10 }
  0x24   :  { %259 = vmatpush3.bf16.msra.mxu0 %v285_v13 }
  0x25   :  { %260 = vmatprep.subr.bf16.mxu0 %v286_v14 }
  0x28   :  { %261 = vmatpush3.bf16.msra.mxu0 %v287_v15 }
  0x29   :  { %262 = vmatprep.subr.bf16.mxu0 %v288_v16 }
  0x2c   :  { %263 = vmatpush3.bf16.msra.mxu0 %v289_v17 }
  0x2f   :  { %206 = vmatmul.mubr.bf16.vlgmr.msra.gmra.mxu0 %v230_v18 }
  0xef   :  { %v264_v19 = vpop.f32.mrf.mxu0 }
  0xf1   :  { %v265_v21 = vpop.f32.mrf.mxu0 }
  0xf2   :  { %v266_v22 = vadd.f32 %v265_v21, %v264_v19 }
  0xf3   :  { %v267_v23 = vpop.f32.mrf.mxu0 }
  0xf4   :  { %v208_v24 = vadd.f32 %v266_v22, %v229_v20 }
  0xf5   :  { %v268_v25 = vpop.f32.mrf.mxu0 }
  0xf6   :  { %213 = vst [vmem:[#allocation5] sm:$0xff] %v208_v24 }
  0xf7   :  { %323 = shalt.err (!%p320_p9)
}
  0xf8   :  { %223 = dma.vmem_to_hbm [thread:$0]  %s221_s22, 128, %s375_s3, [#allocation4]  }
  0xf9   :  { %334 = dma.done.wait [#allocation4], 128  }
  0xfa   :  { %335 = vsyncadd [#allocation4], 4294967168 }
  0xfb   :  { %227 = vsyncpa [#allocation3], 1 }
  0xfc   :  { %228 = vsyncpa [#allocation4], 1 }

</bundles_post_ra>
